<compile_context>
chip_gen: v5e
topology: v5e:2x2
jax: 0.10.0
libtpu: 0.0.40
codegen_flags: <defaults>
</compile_context>

<pallas_src>
import jax
import jax.numpy as jnp
from jax.experimental import pallas as pl
from jax.experimental.pallas import tpu as pltpu


def _make_wlayernorm2d_kernel(W, K, eps):
    WK = W * K
    inv_w = 1.0 / W          # Python float -> jaxpr literal, not a captured const
    eps = float(eps)

    def _rot(t, shift):
        # Cyclic rotate along the lane axis: rot(t, d)[:, j] = t[:, (j + d) % WK].
        # Static slices + concatenate: supported by Mosaic and interpret mode.
        d = shift % WK
        if d == 0:
            return t
        return jnp.concatenate([t[:, d:], t[:, :d]], axis=1)

    if W & (W - 1) == 0:
        # W power of two: log2(W) rotate-adds give the full stride-K group sum
        # at every lane position.
        def _group_mean(t):
            s = t
            shift = K
            while shift < WK:
                s = s + _rot(s, shift)
                shift *= 2
            return s * inv_w
    else:
        # General W: linear rotate-sum (W-1 shifted adds, still exact f32).
        def _group_mean(t):
            s = t
            for i in range(1, W):
                s = s + _rot(t, i * K)
            return s * inv_w

    def kernel(x_ref, w_ref, b_ref, o_ref):
        x = x_ref[...].astype(jnp.float32)            # (rows, W*K), lane-dense
        mu = _group_mean(x)                           # per-position mean over W
        diff = x - mu
        var = _group_mean(diff * diff)                # biased variance
        inv = jax.lax.rsqrt(var + eps)
        w = w_ref[...].astype(jnp.float32)            # (1, W*K), broadcast rows
        b = b_ref[...].astype(jnp.float32)
        o_ref[...] = (diff * inv * w + b).astype(o_ref.dtype)

    return kernel


def wlayernorm2d(x, weight, bias, eps=1e-6, target_block_bytes=1 << 20):
    """x: (B, C, W, K); weight/bias: (1, 1, W, K)."""
    B, C, W, K = x.shape
    assert weight.shape == (1, 1, W, K), weight.shape
    assert bias.shape == (1, 1, W, K), bias.shape
    WK = W * K
    R = B * C

    # Free, contiguous reshapes: lane axis becomes W*K, row axis becomes B*C.
    x2 = x.reshape(R, WK)
    w2 = weight.reshape(1, WK)
    b2 = bias.reshape(1, WK)

    # Row-block sizing: ~target_block_bytes per block (big contiguous DMAs),
    # a multiple of 8 sublanes, and at least two grid steps when possible so
    # both v7x TensorCores get work.
    itemsize = jnp.dtype(x.dtype).itemsize
    rows_target = max(1, target_block_bytes // (WK * itemsize))
    rblk = max(8, (rows_target // 8) * 8)
    if R > 8:
        half_rounded = (((R + 1) // 2 + 7) // 8) * 8   # ceil(R/2) rounded up to 8
        rblk = min(rblk, max(8, half_rounded))
    if rblk >= R:
        rblk = R  # full extent is always a legal block shape
    grid = (pl.cdiv(R, rblk),)

    kernel = _make_wlayernorm2d_kernel(W, K, float(eps))

    out2 = pl.pallas_call(
        kernel,
        out_shape=jax.ShapeDtypeStruct((R, WK), x.dtype),
        grid_spec=pltpu.PrefetchScalarGridSpec(
            num_scalar_prefetch=0,
            grid=grid,
            in_specs=[
                pl.BlockSpec((rblk, WK), lambda i: (i, 0)),
                # Constant index_maps: weight/bias are DMA'd only once.
                pl.BlockSpec((1, WK), lambda i: (0, 0)),
                pl.BlockSpec((1, WK), lambda i: (0, 0)),
            ],
            out_specs=pl.BlockSpec((rblk, WK), lambda i: (i, 0)),
        ),
        compiler_params=pltpu.CompilerParams(
            dimension_semantics=("parallel",),
            vmem_limit_bytes=32 * 1024 * 1024,
        ),
    )(x2, w2, b2)

    return out2.reshape(B, C, W, K)


if __name__ == "__main__":
    B, C, num_waves, k = 2, 4, 8, 16
    eps = 1e-6

    key = jax.random.PRNGKey(0)
    kx, kw, kb = jax.random.split(key, 3)
    x = jax.random.normal(kx, (B, C, num_waves, k), dtype=jnp.float32)
    # Module init is ones/zeros; use deterministic random affine params so the
    # scale/shift path is actually exercised by the check.
    weight = 1.0 + 0.1 * jax.random.normal(kw, (1, 1, num_waves, k), dtype=jnp.float32)
    bias = 0.1 * jax.random.normal(kb, (1, 1, num_waves, k), dtype=jnp.float32)

    out = wlayernorm2d(x, weight, bias, eps=eps)
    out = jax.block_until_ready(out)

    # Pure-JAX reference (matches PyTorch: biased var, eps inside sqrt).
    mu = jnp.mean(x, axis=-2, keepdims=True)
    var = jnp.mean((x - mu) ** 2, axis=-2, keepdims=True)
    ref = (x - mu) / jnp.sqrt(var + eps) * weight + bias
    assert jnp.allclose(out, ref, atol=1e-5, rtol=1e-5), "mismatch vs reference"

    print("KERNEL_OK")
</pallas_src>

<mosaic_0001>
module attributes {stable_mosaic.version = 11 : i64} {
  func.func @kernel(%arg0: i32, %arg1: memref<8x128xf32, #tpu.memory_space<vmem>>, %arg2: memref<1x128xf32, #tpu.memory_space<vmem>>, %arg3: memref<1x128xf32, #tpu.memory_space<vmem>>, %arg4: memref<8x128xf32, #tpu.memory_space<vmem>>) attributes {dimension_semantics = [#tpu.dimension_semantics<parallel>], iteration_bounds = array<i64: 1>, scalar_prefetch = 0 : i64, scratch_operands = 0 : i64, tpu.core_type = #tpu.core_type<tc>, window_params = [{transform_indices = @transform_0, window_bounds = array<i64: 8, 128>}, {pipeline_mode = #tpu.pipeline_mode<synchronous>, transform_indices = @transform_1, window_bounds = array<i64: 1, 128>}, {pipeline_mode = #tpu.pipeline_mode<synchronous>, transform_indices = @transform_2, window_bounds = array<i64: 1, 128>}, {transform_indices = @transform_3, window_bounds = array<i64: 8, 128>}]} {
    %c0 = arith.constant 0 : index
    %c0_0 = arith.constant 0 : index
    %0 = vector.load %arg1[%c0, %c0_0] : memref<8x128xf32, #tpu.memory_space<vmem>>, vector<8x128xf32>
    %1 = vector.extract_strided_slice %0 {offsets = [0, 16], sizes = [8, 112], strides = [1, 1]} : vector<8x128xf32> to vector<8x112xf32>
    %2 = vector.extract_strided_slice %0 {offsets = [0, 0], sizes = [8, 16], strides = [1, 1]} : vector<8x128xf32> to vector<8x16xf32>
    %3 = tpu.concatenate %1, %2 in 1 : vector<8x112xf32>, vector<8x16xf32> -> vector<8x128xf32>
    %4 = arith.addf %0, %3 : vector<8x128xf32>
    %5 = vector.extract_strided_slice %4 {offsets = [0, 32], sizes = [8, 96], strides = [1, 1]} : vector<8x128xf32> to vector<8x96xf32>
    %6 = vector.extract_strided_slice %4 {offsets = [0, 0], sizes = [8, 32], strides = [1, 1]} : vector<8x128xf32> to vector<8x32xf32>
    %7 = tpu.concatenate %5, %6 in 1 : vector<8x96xf32>, vector<8x32xf32> -> vector<8x128xf32>
    %8 = arith.addf %4, %7 : vector<8x128xf32>
    %9 = vector.extract_strided_slice %8 {offsets = [0, 64], sizes = [8, 64], strides = [1, 1]} : vector<8x128xf32> to vector<8x64xf32>
    %10 = vector.extract_strided_slice %8 {offsets = [0, 0], sizes = [8, 64], strides = [1, 1]} : vector<8x128xf32> to vector<8x64xf32>
    %11 = tpu.concatenate %9, %10 in 1 : vector<8x64xf32>, vector<8x64xf32> -> vector<8x128xf32>
    %12 = arith.addf %8, %11 : vector<8x128xf32>
    %cst = arith.constant 1.250000e-01 : f32
    %13 = vector.broadcast %cst : f32 to vector<8x128xf32>
    %14 = arith.mulf %12, %13 : vector<8x128xf32>
    %15 = arith.subf %0, %14 : vector<8x128xf32>
    %16 = arith.mulf %15, %15 : vector<8x128xf32>
    %17 = vector.extract_strided_slice %16 {offsets = [0, 16], sizes = [8, 112], strides = [1, 1]} : vector<8x128xf32> to vector<8x112xf32>
    %18 = vector.extract_strided_slice %16 {offsets = [0, 0], sizes = [8, 16], strides = [1, 1]} : vector<8x128xf32> to vector<8x16xf32>
    %19 = tpu.concatenate %17, %18 in 1 : vector<8x112xf32>, vector<8x16xf32> -> vector<8x128xf32>
    %20 = arith.addf %16, %19 : vector<8x128xf32>
    %21 = vector.extract_strided_slice %20 {offsets = [0, 32], sizes = [8, 96], strides = [1, 1]} : vector<8x128xf32> to vector<8x96xf32>
    %22 = vector.extract_strided_slice %20 {offsets = [0, 0], sizes = [8, 32], strides = [1, 1]} : vector<8x128xf32> to vector<8x32xf32>
    %23 = tpu.concatenate %21, %22 in 1 : vector<8x96xf32>, vector<8x32xf32> -> vector<8x128xf32>
    %24 = arith.addf %20, %23 : vector<8x128xf32>
    %25 = vector.extract_strided_slice %24 {offsets = [0, 64], sizes = [8, 64], strides = [1, 1]} : vector<8x128xf32> to vector<8x64xf32>
    %26 = vector.extract_strided_slice %24 {offsets = [0, 0], sizes = [8, 64], strides = [1, 1]} : vector<8x128xf32> to vector<8x64xf32>
    %27 = tpu.concatenate %25, %26 in 1 : vector<8x64xf32>, vector<8x64xf32> -> vector<8x128xf32>
    %28 = arith.addf %24, %27 : vector<8x128xf32>
    %cst_1 = arith.constant 1.250000e-01 : f32
    %29 = vector.broadcast %cst_1 : f32 to vector<8x128xf32>
    %30 = arith.mulf %28, %29 : vector<8x128xf32>
    %cst_2 = arith.constant 9.99999997E-7 : f32
    %31 = vector.broadcast %cst_2 : f32 to vector<8x128xf32>
    %32 = arith.addf %30, %31 : vector<8x128xf32>
    %33 = math.rsqrt %32 : vector<8x128xf32>
    %c0_3 = arith.constant 0 : index
    %c0_4 = arith.constant 0 : index
    %34 = vector.load %arg2[%c0_3, %c0_4] : memref<1x128xf32, #tpu.memory_space<vmem>>, vector<1x128xf32>
    %c0_5 = arith.constant 0 : index
    %c0_6 = arith.constant 0 : index
    %35 = vector.load %arg3[%c0_5, %c0_6] : memref<1x128xf32, #tpu.memory_space<vmem>>, vector<1x128xf32>
    %36 = arith.mulf %15, %33 : vector<8x128xf32>
    %37 = vector.broadcast %34 : vector<1x128xf32> to vector<8x128xf32>
    %38 = arith.mulf %36, %37 : vector<8x128xf32>
    %39 = vector.broadcast %35 : vector<1x128xf32> to vector<8x128xf32>
    %40 = arith.addf %38, %39 : vector<8x128xf32>
    %c0_7 = arith.constant 0 : index
    %c0_8 = arith.constant 0 : index
    %41 = vector.load %arg4[%c0_7, %c0_8] : memref<8x128xf32, #tpu.memory_space<vmem>>, vector<8x128xf32>
    tpu.vector_store %arg4[%c0_7, %c0_8], %40 {strides = array<i32>} : memref<8x128xf32, #tpu.memory_space<vmem>>, vector<8x128xf32>,
    return
  }
  func.func @transform_0(%arg0: i32) -> (i32, i32) {
    %c0_i32 = arith.constant 0 : i32
    %c0_i32_0 = arith.constant 0 : i32
    return %arg0, %c0_i32 : i32, i32
  }
  func.func @transform_1(%arg0: i32) -> (i32, i32) {
    %c0_i32 = arith.constant 0 : i32
    %c0_i32_0 = arith.constant 0 : i32
    %c0_i32_1 = arith.constant 0 : i32
    return %c0_i32, %c0_i32_0 : i32, i32
  }
  func.func @transform_2(%arg0: i32) -> (i32, i32) {
    %c0_i32 = arith.constant 0 : i32
    %c0_i32_0 = arith.constant 0 : i32
    %c0_i32_1 = arith.constant 0 : i32
    return %c0_i32, %c0_i32_0 : i32, i32
  }
  func.func @transform_3(%arg0: i32) -> (i32, i32) {
    %c0_i32 = arith.constant 0 : i32
    %c0_i32_0 = arith.constant 0 : i32
    return %arg0, %c0_i32 : i32, i32
  }
}

</mosaic_0001>

<bundles_post_ra>
// kernel: tpu_custom_call.1
= control target key start
LH: loop header
LB: loop body
LE: loop exit
PB: predicated region body
PF: predicated region fallthrough
CT: control target
= control target key end

     0   :  { %8 = vsyncpa [#allocation3], 0  ;;  %s245_s0 = inlined_call_operand.hbm [shape: f32[8,128], index: 0, kind: input, shape index: {}]   ;;  %s246_s1 = inlined_call_operand.hbm [shape: f32[1,128], index: 1, kind: input, shape index: {}]   ;;  %s247_s2 = inlined_call_operand.vmem [shape: f32[1,128], index: 2, kind: input, shape index: {}]   ;;  %s248_s3 = inlined_call_operand.hbm [shape: f32[8,128], index: 3, kind: output, shape index: {}]  }
   0x1   :  { %9 = vsyncpa [#allocation6], 0 }
   0x2   :  { %10 = vsyncpa [#allocation4], 0  ;;  %s16_s14 = sshll.u32 %s245_s0, 4  ;;  %s207_s15 = smov [#allocation2]   ;;  %s17_s14 = int_to_ptr.hbm [resolvable:$true] %s16_s14 }
   0x3   :  { %s18_s16 = sshll.u32 %s207_s15, 4  ;;  %s27_s19 = sshll.u32 %s246_s1, 4  ;;  %s19_s16 = int_to_ptr.vmem [resolvable:$true] %s18_s16  ;;  %s28_s19 = int_to_ptr.hbm [resolvable:$true] %s27_s19 }
   0x4   :  { %21 = dma.hbm_to_vmem [thread:$0]  %s17_s14, 128, %s19_s16, [#allocation3]  }
   0x5   :  { %s208_s20 = smov [#allocation5]  }
   0x6   :  { %s29_s21 = sshll.u32 %s208_s20, 4  ;;  %s30_s21 = int_to_ptr.vmem [resolvable:$true] %s29_s21 }
   0x7   :  { %32 = dma.hbm_to_vmem [thread:$0]  %s28_s19, 16, %s30_s21, [#allocation6]  }
   0x8   :  { %201 = dma.done.wait [#allocation3], 128  }
   0x9   :  { %202 = vsyncadd [#allocation3], 4294967168 }
   0xa   :  { %203 = dma.done.wait [#allocation6], 16  }
   0xb   :  { %204 = vsyncadd [#allocation6], 4294967280  ;;  %v43_v0 = vld [vmem:[#allocation2] sm:$0xff]  ;;  %s209_s0 = smov 112   ;;  %s210_s22 = smov 96  }
   0xc   :  { %45 = vrot.lane.b32.xlu0 %v43_v0, %s209_s0  ;;  %s211_s1 = smov 64   ;;  %v125_v24 = vld [vmem:[#allocation5] ss:$0 sm:$0xff]  ;;  %v126_v27 = vld [vmem:[%s247_s2] ss:$0 sm:$0xff]  ;;  %s212_s25 = smov [#allocation7]  }
   0xd   :  { %s106_s26 = sshll.u32 %s212_s25, 4  ;;  %s108_s29 = sshll.u32 %s248_s3, 4  ;;  %s107_s26 = int_to_ptr.vmem [resolvable:$true] %s106_s26  ;;  %s109_s29 = int_to_ptr.hbm [resolvable:$true] %s108_s29 }
  0x7e   :  { %v46_v1 = vpop.permute.xlu0 %45 }
  0x7f   :  { %v48_v2 = vadd.f32 %v46_v1, %v43_v0 }
  0x81   :  { %50 = vrot.lane.b32.xlu0 %v48_v2, %s210_s22 }
  0xf3   :  { %v51_v3 = vpop.permute.xlu0 %50 }
  0xf4   :  { %v53_v4 = vadd.f32 %v51_v3, %v48_v2 }
  0xf6   :  { %55 = vrot.lane.b32.xlu1 %v53_v4, %s211_s1 }
 0x168   :  { %v56_v5 = vpop.permute.xlu1 %55 }
 0x169   :  { %v58_v6 = vadd.f32 %v56_v5, %v53_v4 }
 0x16b   :  { %v59_v7 = vmul.f32 0.125, %v58_v6 }
 0x16d   :  { %v60_v8 = vsub.f32 %v43_v0, %v59_v7 }
 0x16f   :  { %v61_v9 = vmul.f32 %v60_v8, %v60_v8 }
 0x171   :  { %63 = vrot.lane.b32.xlu1 %v61_v9, %s209_s0 }
 0x1e3   :  { %v64_v10 = vpop.permute.xlu1 %63 }
 0x1e4   :  { %v66_v11 = vadd.f32 %v64_v10, %v61_v9 }
 0x1e6   :  { %68 = vrot.lane.b32.xlu2 %v66_v11, %s210_s22 }
 0x240   :  { %v69_v12 = vpop.permute.xlu2 %68 }
 0x241   :  { %v71_v13 = vadd.f32 %v69_v12, %v66_v11 }
 0x243   :  { %73 = vrot.lane.b32.xlu2 %v71_v13, %s211_s1 }
 0x29d   :  { %v74_v14 = vpop.permute.xlu2 %73 }
 0x29e   :  { %v76_v15 = vadd.f32 %v74_v14, %v71_v13 }
 0x2a0   :  { %v77_v16 = vmul.f32 0.125, %v76_v15 }
 0x2a2   :  { %v78_v17 = vadd.f32 1e-06, %v77_v16 }
 0x2a4   :  { %127 = vrsqrt.f32 %v78_v17  ;;  %vm85_vm1 = vweird.f32 %v78_v17 }
 0x2aa   :  { %v128_v18 = vpop.eup %127 }
 0x2ab   :  { %v80_v19 = vmul.f32 %v128_v18, %v78_v17  ;;  %vm86_vm0 = vweird.f32 %v128_v18 }
 0x2ac   :  { %vm87_vm2 = vmor %vm85_vm1, %vm86_vm0 }
 0x2ad   :  { %v81_v20 = vmul.f32 %v128_v18, %v80_v19 }
 0x2af   :  { %v82_v21 = vmul.f32 0.5, %v81_v20 }
 0x2b1   :  { %v83_v22 = vsub.f32 1.5, %v82_v21 }
 0x2b3   :  { %v84_v23 = vmul.f32 %v128_v18, %v83_v22 }
 0x2b5   :  { %v88_v25 = vsel %vm87_vm2, %v128_v18, %v84_v23 }
 0x2b6   :  { %v91_v26 = vmul.f32 %v88_v25, %v60_v8 }
 0x2b8   :  { %v95_v28 = vmul.f32 %v125_v24, %v91_v26 }
 0x2ba   :  { %v99_v29 = vadd.f32 %v126_v27, %v95_v28 }
 0x2bc   :  { %100 = vst [vmem:[#allocation7] sm:$0xff] %v99_v29 }
 0x2bd   :  { %111 = dma.vmem_to_hbm [thread:$0]  %s107_s26, 128, %s109_s29, [#allocation4]  }
 0x2be   :  { %205 = dma.done.wait [#allocation4], 128  }
 0x2bf   :  { %206 = vsyncadd [#allocation4], 4294967168 }
 0x2c0   :  { %116 = vsyncpa [#allocation3], 1 }
 0x2c1   :  { %117 = vsyncpa [#allocation6], 1 }
 0x2c2   :  { %118 = vsyncpa [#allocation4], 1 }

</bundles_post_ra>
